<compile_context>
chip_gen: v7x
topology: tpu7x:2x2x1
jax: 0.10.0
libtpu: 0.0.40
codegen_flags: <defaults>
</compile_context>

<pallas_src>
import functools

import jax
import jax.numpy as jnp
from jax.experimental import pallas as pl
from jax.experimental.pallas import tpu as pltpu


def _round_up(x, m):
    return (x + m - 1) // m * m


def _pick_g_tile(num_windows, t_tile, target_m):
    """Windows folded per grid step: aim for matmul M ~= target_m rows, but
    keep at least two grid steps when there is more than one window so both
    v7x TensorCores (and the DMA pipeline) have work."""
    cap = max(1, target_m // t_tile)
    best = 1
    for d in range(1, num_windows + 1):
        if num_windows % d == 0 and d <= cap:
            best = d
    if best == num_windows and num_windows > 1:
        best = max(d for d in range(1, num_windows) if num_windows % d == 0)
    return best


def _conv1d_kernel(x_ref, w_ref, b_ref, o_ref, *, kernel_size, stride,
                   dilation, t_tile):
    # x_ref : (g_tile, t_win, C_in)   overlapping input windows (halo included)
    # w_ref : (K, C_in, C_out)        grid-invariant, fetched once
    # b_ref : (1, C_out)              f32 bias
    # o_ref : (g_tile, t_tile, C_out)
    g_tile, _, c_in = x_ref.shape
    c_out = o_ref.shape[-1]

    acc = jnp.zeros((g_tile * t_tile, c_out), jnp.float32)
    for k in range(kernel_size):             # K is small & static -> unrolled
        start = k * dilation
        if stride == 1:
            xk = x_ref[:, start:start + t_tile, :]
        else:
            # decimation baked into the (sublane-strided) load instead of a
            # materialized strided slice of a loaded window
            xk = x_ref[:, pl.ds(start, t_tile, stride=stride), :]
        # t_tile is a multiple of 16 -> sublane-aligned merge of leading dims
        lhs = xk.reshape(g_tile * t_tile, c_in)
        acc = acc + jnp.dot(lhs, w_ref[k], preferred_element_type=jnp.float32)

    acc = acc + b_ref[...].astype(jnp.float32)
    o_ref[...] = acc.reshape(g_tile, t_tile, c_out).astype(o_ref.dtype)


def conv_forward(x, weight, bias=None, *, stride=1, padding=0, dilation=1,
                 t_tile_max=1024, target_m=512,
                 vmem_budget_bytes=24 * 1024 * 1024, compute_dtype=None):
    """Equivalent of Conv.forward.

    x      : (B, T, C_in)      channels-last activations
    weight : (C_out, C_in, K)  PyTorch Conv1d weight layout
    bias   : (C_out,) or None
    compute_dtype : optionally cast x / weight (e.g. jnp.bfloat16); the
                    accumulation and bias epilogue stay f32.
    """
    B, T, C_in = x.shape
    C_out, C_in_w, K = weight.shape
    assert C_in_w == C_in, (C_in_w, C_in)

    halo = dilation * (K - 1)
    T_out = (T + 2 * padding - halo - 1) // stride + 1
    assert T_out >= 1, "conv produces empty output"

    in_dtype = jnp.dtype(compute_dtype) if compute_dtype is not None else x.dtype
    out_dtype = x.dtype
    in_item = jnp.dtype(in_dtype).itemsize
    out_item = jnp.dtype(out_dtype).itemsize

    w_bytes = K * C_in * C_out * in_item
    single_buf_w = w_bytes > (2 << 20)   # only worth single-buffering when big

    # ---- plan tile sizes: shrink the time tile until one step's buffers fit
    # a conservative VMEM budget (safe on v7x's 64 MiB / 32 MiB scoped default;
    # v5e/v6e have more, so the same plan is fine there too).
    t_cap = max(16, int(t_tile_max))
    while True:
        # 16-row granularity keeps block / reshape alignment valid for bf16 too
        t_tile = min(_round_up(t_cap, 16), _round_up(T_out, 16))
        num_t = pl.cdiv(T_out, t_tile)
        t_win = _round_up((t_tile - 1) * stride + halo + 1, 8)
        num_win = B * num_t
        g_tile = _pick_g_tile(num_win, t_tile, target_m)
        est = (2 * g_tile * t_win * C_in * in_item        # double-buffered input
               + 2 * g_tile * t_tile * C_out * out_item   # double-buffered output
               + (1 if single_buf_w else 2) * w_bytes     # weights
               + g_tile * t_tile * C_out * 4              # f32 accumulator
               + (1 << 20))                               # slack
        if est <= vmem_budget_bytes or t_tile <= 16:
            break
        t_cap = t_tile // 2

    # ---- build zero-padded, overlapping input windows in HBM.  For the
    # module's usual single-tile case this is just the conv padding (plus a
    # small tail of zeros); multi-tile cases duplicate only the halo rows.
    # TODO(synk): fold the boundary zero-fill into the kernel (pl.when on the
    # first/last window) to avoid this extra HBM pass over x.
    t_in_step = t_tile * stride
    needed = (num_t - 1) * t_in_step + t_win
    pad_r = max(0, needed - padding - T)
    x_c = x.astype(in_dtype)
    if padding or pad_r:
        x_p = jnp.pad(x_c, ((0, 0), (padding, pad_r), (0, 0)))
    else:
        x_p = x_c
    if num_t == 1:
        x_win = x_p[:, :t_win]
    else:
        x_win = jnp.stack(
            [x_p[:, i * t_in_step:i * t_in_step + t_win] for i in range(num_t)],
            axis=1).reshape(num_win, t_win, C_in)

    # weight (C_out, C_in, K) -> (K, C_in, C_out); channels stay unpadded.
    w = jnp.transpose(weight, (2, 1, 0)).astype(in_dtype)
    if bias is None:
        bias = jnp.zeros((C_out,), jnp.float32)
    b2 = bias.astype(jnp.float32).reshape(1, C_out)

    # Grid-invariant weights: fetched once (constant index map); single-buffer
    # them only when the block is large enough for the VMEM saving to matter
    # (keeps small/demo shapes on the default, well-tested path).
    w_spec_kwargs = dict(pipeline_mode=pl.Buffered(1)) if single_buf_w else {}

    kernel = functools.partial(_conv1d_kernel, kernel_size=K, stride=stride,
                               dilation=dilation, t_tile=t_tile)

    # Never below the default scoped limit, capped at v7x's physical 64 MiB.
    vmem_limit = int(min(64 << 20, max(32 << 20, 2 * est)))

    out = pl.pallas_call(
        kernel,
        out_shape=jax.ShapeDtypeStruct((num_win, t_tile, C_out), out_dtype),
        grid=(num_win // g_tile,),
        in_specs=[
            pl.BlockSpec((g_tile, t_win, C_in), lambda g: (g, 0, 0)),
            pl.BlockSpec((K, C_in, C_out), lambda g: (0, 0, 0), **w_spec_kwargs),
            pl.BlockSpec((1, C_out), lambda g: (0, 0)),
        ],
        out_specs=pl.BlockSpec((g_tile, t_tile, C_out), lambda g: (g, 0, 0)),
        compiler_params=pltpu.CompilerParams(
            dimension_semantics=("parallel",),
            vmem_limit_bytes=vmem_limit),
    )(x_win, w, b2)

    out = out.reshape(B, num_t * t_tile, C_out)
    if num_t * t_tile != T_out:
        out = out[:, :T_out]
    return out


def _conv_reference(x, weight, bias, *, stride, padding, dilation):
    # same math as PyTorch: transpose -> Conv1d -> transpose
    y = jax.lax.conv_general_dilated(
        jnp.transpose(x, (0, 2, 1)), weight,
        window_strides=(stride,), padding=((padding, padding),),
        rhs_dilation=(dilation,),
        dimension_numbers=("NCW", "OIW", "NCW"))
    y = jnp.transpose(y, (0, 2, 1))
    if bias is not None:
        y = y + bias[None, None, :]
    return y


def _xavier_uniform(key, c_out, c_in, k):
    # matches nn.init.xavier_uniform_ with gain('linear') = 1 on Conv1d weight
    fan_in, fan_out = c_in * k, c_out * k
    bound = (6.0 / (fan_in + fan_out)) ** 0.5
    return jax.random.uniform(key, (c_out, c_in, k), jnp.float32,
                              minval=-bound, maxval=bound)


if __name__ == "__main__":
    key = jax.random.PRNGKey(0)

    # (B, T, C_in, C_out, K, stride, padding, dilation, t_tile_max)
    configs = [
        (2, 8, 32, 32, 3, 1, 1, 1, 1024),   # module-typical: k=3, 'same' padding
        (2, 20, 32, 48, 3, 1, 2, 2, 16),    # dilated, multiple time windows, g_tile>1
        (2, 8, 32, 64, 1, 1, 0, 1, 1024),   # module default kernel_size=1
    ]
    for i, (B, T, C_in, C_out, K, s, p, d, ttm) in enumerate(configs):
        key, kx, kw, kb = jax.random.split(key, 4)
        x = jax.random.normal(kx, (B, T, C_in), jnp.float32)
        weight = _xavier_uniform(kw, C_out, C_in, K)
        bound = 1.0 / (C_in * K) ** 0.5
        bias = jax.random.uniform(kb, (C_out,), jnp.float32,
                                  minval=-bound, maxval=bound)

        y = conv_forward(x, weight, bias, stride=s, padding=p, dilation=d,
                         t_tile_max=ttm)
        y = jax.block_until_ready(y)

        ref = _conv_reference(x, weight, bias, stride=s, padding=p, dilation=d)
        assert y.shape == ref.shape, (i, y.shape, ref.shape)
        err = float(jnp.max(jnp.abs(y - ref)))
        assert jnp.allclose(y, ref, atol=2e-4, rtol=2e-4), (i, err)

    print("KERNEL_OK")
</pallas_src>

<mosaic_0001>
module attributes {stable_mosaic.version = 11 : i64} {
  func.func @_conv1d_kernel(%arg0: i32, %arg1: memref<1x24x32xf32, #tpu.memory_space<vmem>>, %arg2: memref<3x32x32xf32, #tpu.memory_space<vmem>>, %arg3: memref<1x32xf32, #tpu.memory_space<vmem>>, %arg4: memref<1x16x32xf32, #tpu.memory_space<vmem>>) attributes {dimension_semantics = [#tpu.dimension_semantics<parallel>], iteration_bounds = array<i64: 2>, scalar_prefetch = 0 : i64, scratch_operands = 0 : i64, tpu.core_type = #tpu.core_type<tc>, window_params = [{transform_indices = @transform_0, window_bounds = array<i64: 1, 24, 32>}, {pipeline_mode = #tpu.pipeline_mode<synchronous>, transform_indices = @transform_1, window_bounds = array<i64: 3, 32, 32>}, {pipeline_mode = #tpu.pipeline_mode<synchronous>, transform_indices = @transform_2, window_bounds = array<i64: 1, 32>}, {transform_indices = @transform_3, window_bounds = array<i64: 1, 16, 32>}]} {
    %cst = arith.constant 0.000000e+00 : f32
    %0 = vector.broadcast %cst : f32 to vector<16x32xf32>
    %c0 = arith.constant 0 : index
    %c0_0 = arith.constant 0 : index
    %c0_1 = arith.constant 0 : index
    %1 = vector.load %arg1[%c0, %c0_0, %c0_1] : memref<1x24x32xf32, #tpu.memory_space<vmem>>, vector<1x16x32xf32>
    %2 = vector.shape_cast %1 : vector<1x16x32xf32> to vector<16x32xf32>
    %c0_2 = arith.constant 0 : index
    %c0_3 = arith.constant 0 : index
    %c0_4 = arith.constant 0 : index
    %3 = vector.load %arg2[%c0_2, %c0_3, %c0_4] : memref<3x32x32xf32, #tpu.memory_space<vmem>>, vector<1x32x32xf32>
    %4 = vector.shape_cast %3 : vector<1x32x32xf32> to vector<32x32xf32>
    %cst_5 = arith.constant dense<0.000000e+00> : vector<16x32xf32>
    %5 = tpu.matmul %2, %4, %cst_5 {dimension_numbers = #tpu.dot_dimension_numbers<[1], [0], [0], [1], [0, 0, 1, 1], [], []>} : vector<16x32xf32>, vector<32x32xf32>, vector<16x32xf32> -> vector<16x32xf32>
    %6 = arith.addf %0, %5 : vector<16x32xf32>
    %c0_6 = arith.constant 0 : index
    %c1 = arith.constant 1 : index
    %c0_7 = arith.constant 0 : index
    %7 = vector.load %arg1[%c0_6, %c1, %c0_7] : memref<1x24x32xf32, #tpu.memory_space<vmem>>, vector<1x16x32xf32>
    %8 = vector.shape_cast %7 : vector<1x16x32xf32> to vector<16x32xf32>
    %c1_8 = arith.constant 1 : index
    %c0_9 = arith.constant 0 : index
    %c0_10 = arith.constant 0 : index
    %9 = vector.load %arg2[%c1_8, %c0_9, %c0_10] : memref<3x32x32xf32, #tpu.memory_space<vmem>>, vector<1x32x32xf32>
    %10 = vector.shape_cast %9 : vector<1x32x32xf32> to vector<32x32xf32>
    %cst_11 = arith.constant dense<0.000000e+00> : vector<16x32xf32>
    %11 = tpu.matmul %8, %10, %cst_11 {dimension_numbers = #tpu.dot_dimension_numbers<[1], [0], [0], [1], [0, 0, 1, 1], [], []>} : vector<16x32xf32>, vector<32x32xf32>, vector<16x32xf32> -> vector<16x32xf32>
    %12 = arith.addf %6, %11 : vector<16x32xf32>
    %c0_12 = arith.constant 0 : index
    %c2 = arith.constant 2 : index
    %c0_13 = arith.constant 0 : index
    %13 = vector.load %arg1[%c0_12, %c2, %c0_13] : memref<1x24x32xf32, #tpu.memory_space<vmem>>, vector<1x16x32xf32>
    %14 = vector.shape_cast %13 : vector<1x16x32xf32> to vector<16x32xf32>
    %c2_14 = arith.constant 2 : index
    %c0_15 = arith.constant 0 : index
    %c0_16 = arith.constant 0 : index
    %15 = vector.load %arg2[%c2_14, %c0_15, %c0_16] : memref<3x32x32xf32, #tpu.memory_space<vmem>>, vector<1x32x32xf32>
    %16 = vector.shape_cast %15 : vector<1x32x32xf32> to vector<32x32xf32>
    %cst_17 = arith.constant dense<0.000000e+00> : vector<16x32xf32>
    %17 = tpu.matmul %14, %16, %cst_17 {dimension_numbers = #tpu.dot_dimension_numbers<[1], [0], [0], [1], [0, 0, 1, 1], [], []>} : vector<16x32xf32>, vector<32x32xf32>, vector<16x32xf32> -> vector<16x32xf32>
    %18 = arith.addf %12, %17 : vector<16x32xf32>
    %c0_18 = arith.constant 0 : index
    %c0_19 = arith.constant 0 : index
    %19 = vector.load %arg3[%c0_18, %c0_19] : memref<1x32xf32, #tpu.memory_space<vmem>>, vector<1x32xf32>
    %20 = vector.broadcast %19 : vector<1x32xf32> to vector<16x32xf32>
    %21 = arith.addf %18, %20 : vector<16x32xf32>
    %22 = vector.shape_cast %21 : vector<16x32xf32> to vector<1x16x32xf32>
    %c0_20 = arith.constant 0 : index
    %c0_21 = arith.constant 0 : index
    %c0_22 = arith.constant 0 : index
    %23 = vector.load %arg4[%c0_20, %c0_21, %c0_22] : memref<1x16x32xf32, #tpu.memory_space<vmem>>, vector<1x16x32xf32>
    tpu.vector_store %arg4[%c0_20, %c0_21, %c0_22], %22 {strides = array<i32>} : memref<1x16x32xf32, #tpu.memory_space<vmem>>, vector<1x16x32xf32>,
    return
  }
  func.func @transform_0(%arg0: i32) -> (i32, i32, i32) {
    %c0_i32 = arith.constant 0 : i32
    %c0_i32_0 = arith.constant 0 : i32
    %c0_i32_1 = arith.constant 0 : i32
    return %arg0, %c0_i32, %c0_i32_0 : i32, i32, i32
  }
  func.func @transform_1(%arg0: i32) -> (i32, i32, i32) {
    %c0_i32 = arith.constant 0 : i32
    %c0_i32_0 = arith.constant 0 : i32
    %c0_i32_1 = arith.constant 0 : i32
    %c0_i32_2 = arith.constant 0 : i32
    return %c0_i32, %c0_i32_0, %c0_i32_1 : i32, i32, i32
  }
  func.func @transform_2(%arg0: i32) -> (i32, i32) {
    %c0_i32 = arith.constant 0 : i32
    %c0_i32_0 = arith.constant 0 : i32
    %c0_i32_1 = arith.constant 0 : i32
    return %c0_i32, %c0_i32_0 : i32, i32
  }
  func.func @transform_3(%arg0: i32) -> (i32, i32, i32) {
    %c0_i32 = arith.constant 0 : i32
    %c0_i32_0 = arith.constant 0 : i32
    %c0_i32_1 = arith.constant 0 : i32
    return %arg0, %c0_i32, %c0_i32_0 : i32, i32, i32
  }
}

</mosaic_0001>

<bundles_post_ra>
// kernel: tpu_custom_call.1
= control target key start
LH: loop header
LB: loop body
LE: loop exit
PB: predicated region body
PF: predicated region fallthrough
CT: control target
= control target key end

     0   :  { %8 = vsyncpa [#allocation3], 0  ;;  %s1126_s0 = inlined_call_operand.hbm [shape: f32[2,24,32], index: 0, kind: input, shape index: {}]   ;;  %s1127_s1 = inlined_call_operand.hbm [shape: f32[3,32,32], index: 1, kind: input, shape index: {}]   ;;  %s1128_s2 = inlined_call_operand.vmem [shape: f32[1,32], index: 2, kind: input, shape index: {}]   ;;  %s1129_s3 = inlined_call_operand.hbm [shape: f32[2,16,32], index: 3, kind: output, shape index: {}]  }
   0x1   :  { %10 = vsyncpa [#allocation3 + $0x1], 0 }
   0x2   :  { %11 = vsyncpa [#allocation6], 0 }
   0x3   :  { %12 = vsyncpa [#allocation4], 0 }
   0x4   :  { %14 = vsyncpa [#allocation4 + $0x1], 0  ;;  %s899_s12 = smov 0   ;;  %s901_s13 = smov 0  }
   0x5   :  { %s903_s14 = smov 0   ;;  %s905_s15 = smov 0  }
   0x6 LB: > { %s920_s16 = sadd.s32 4294967295, %s870_s15   ;;  %s578_s17 = sadd.s32 4294967294, %s870_s15   ;;  %s870_s15 = sphi %s905_s15, %s1149_s15   ;;  %s866_s14 = sphi %s903_s14, %s1148_s14   ;;  %s862_s13 = sphi %s901_s13, %s1147_s13   ;;  %s858_s12 = sphi %s899_s12, %s1146_s12  }
   0x7   : > { %p40_p0 = scmp.ne.s32.totalorder %s862_s13, %s858_s12  ;;  %p1130_p1 = scmp.eq.s32.totalorder %s920_s16, 0 }
   0x8   : > { %p112_p3 = scmp.eq.s32.totalorder %s578_s17, 1  ;;  %p579_p5 = scmp.ge.s32.totalorder %s870_s15, 1 }
   0x9   : > { %p929_p4 = por %p1130_p1, %p40_p0  ;;  %p119_p7 = scmp.lt.s32.totalorder %s870_s15, 3 }
   0xa   : > { %p934_p6 = por %p112_p3, %p40_p0  ;;  %s872_s21 = smov [#allocation5]  }
   0xb   : > { %s1133_s18 = scalar_select %p929_p4, 1, 0 }
   0xc   : > { %s1134_s19 = scalar_select %p934_p6, 1, 0 }
   0xd   : > { %p939_p8 = pnand %p579_p5, %p119_p7  ;;  %s131_s22 = sshll.u32 %s872_s21, 4  ;;  %s943_s22 = int_to_ptr.vmem [resolvable:$true] %s131_s22 }
   0xe   : > { %s955_s24 = sadd.s32 1, %s870_s15   ;;  %s27_s25 = sadd.s32 1, %s866_s14 }
   0xf   : > { %s1135_s20 = scalar_select %p939_p8, 1, 0 }
  0x10   : > { %p689_p9 = pneg %p939_p8  ;;  %s24_s26 = ssub.s32 %s870_s15, %s955_s24 }
  0x11   : > { %s742_s29 = scalar_lea.hbm %s1127_s1, 1536 }
  0x12   : > { %p950_p11 = pnand %p689_p9, %p1130_p1  ;;  %p743_p12 = scmp.ne.s32.totalorder %s1127_s1, %s742_s29 }
  0x13   : > { %p749_p5 = scmp.lt.u32.totalorder %s742_s29, %s1127_s1 }
  0x14   : > { %p744_p13 = pneg %p950_p11 }
  0x16   : > { %p745_p0 = pnand %p744_p13, %p743_p12 }
  0x18   : > { %p746_p3 = pneg %p745_p0 }
  0x1a   : > { %p751_p7 = pnand %p749_p5, %p746_p3 }
  0x1c   : > { %754 = shalt.err (!%p751_p7)
}
  0x1d   : > { %s755_s7 = scalar_lea.vmem %s943_s22, 1536  ;;  %p763_p2 = scmp.lt.s32.totalorder %s943_s22, %s943_s22 }
  0x1e   : > { %p756_p9 = scmp.ne.s32.totalorder %s943_s22, %s755_s7  ;;  %p764_p6 = scmp.lt.s32.totalorder %s755_s7, %s755_s7 }
  0x20   : > { %p758_p10 = pnand %p756_p9, %p744_p13  ;;  %p765_p4 = por %p764_p6, %p763_p2 }
  0x22   : > { %p759_p1 = pneg %p758_p10 }
  0x24   : > { %p766_p8 = pnand %p765_p4, %p759_p1 }
  0x26   : > { %769 = shalt.err (!%p766_p8)
}
  0x27   : > { %s873_s8 = smov 128   ;;  %s874_s9 = smov 8  }
  0x28   : > { %692 = dma.hbm_to_vmem [thread:$0]  (!%p950_p11), %s1127_s1, 1536, %s943_s22, [#allocation6], %s873_s8, %s873_s8, %s874_s9  }
  0x29   : > { %p25_p1 = scmp.eq.s32.totalorder %s24_s26, 0  ;;  %p34_p2 = scmp.ne.s32.totalorder %s866_s14, %s862_s13 }
  0x2a   : > { %p35_p4 = scmp.eq.s32.totalorder %s870_s15, 0  ;;  %p702_p6 = scmp.lt.s32.totalorder %s870_s15, 2 }
  0x2b   : > { %s989_s17 = scalar_select %p25_p1, %s866_s14, %s27_s25  }
  0x2c   : > { %p36_p8 = por %p35_p4, %p34_p2  ;;  %p1137_p10 = scmp.eq.s32.totalorder %s920_s16, 1 }
  0x2d   : > { %s148_s23 = sand.u32 1, %s866_s14   ;;  %s679_s27 = smul.u32 384, %s870_s15 }
  0x2e   : > { %p993_p12 = por %p1137_p10, %p34_p2  ;;  %s678_s28 = smul.u32 24, %s148_s23 }
  0x2f   : > { %p999_p13 = pnand %p702_p6, %p36_p8  ;;  %s1006_s25 = scalar_lea.hbm %s1126_s0, %s679_s27 }
  0x30   : > { %s152_s30 = scalar_lea.vmem [#allocation2], %s678_s28  ;;  %s1010_s5 = scalar_lea.sflag [#allocation3], %s148_s23 }
  0x31   : > { %s159_s4 = sshll.u32 %s152_s30, 4  ;;  %s770_s6 = scalar_lea.hbm %s1006_s25, 384  ;;  %s1008_s4 = int_to_ptr.vmem [resolvable:$true] %s159_s4 }
  0x32   : > { %p771_p11 = scmp.ne.s32.totalorder %s1006_s25, %s770_s6  ;;  %p772_p0 = pneg %p999_p13 }
  0x33   : > { %s775_s11 = scalar_lea.hbm %s1126_s0, 768  ;;  %p776_p7 = scmp.lt.u32.totalorder %s1006_s25, %s1126_s0 }
  0x34   : > { %p773_p3 = pnand %p772_p0, %p771_p11  ;;  %p777_p9 = scmp.lt.u32.totalorder %s775_s11, %s770_s6 }
  0x35   : > { %p779_p2 = scmp.lt.u32.totalorder %s770_s6, %s1006_s25 }
  0x36   : > { %p774_p5 = pneg %p773_p3  ;;  %p778_p1 = por %p777_p9, %p776_p7 }
  0x38   : > { %p780_p4 = por %p779_p2, %p778_p1 }
  0x3a   : > { %p781_p6 = pnand %p780_p4, %p774_p5 }
  0x3c   : > { %784 = shalt.err (!%p781_p6)
}
  0x3d   : > { %s785_s23 = scalar_lea.vmem %s1008_s4, 384  ;;  %s875_s28 = smov [#allocation2]  }
  0x3e   : > { %p786_p8 = scmp.ne.s32.totalorder %s1008_s4, %s785_s23  ;;  %s790_s26 = sshll.u32 %s875_s28, 4  ;;  %s791_s26 = int_to_ptr.vmem [resolvable:$false] %s790_s26 }
  0x3f   : > { %s792_s30 = scalar_lea.vmem %s791_s26, 768  ;;  %p793_p3 = scmp.lt.s32.totalorder %s1008_s4, %s791_s26 }
  0x40   : > { %p788_p10 = pnand %p786_p8, %p772_p0  ;;  %p794_p7 = scmp.lt.s32.totalorder %s792_s30, %s785_s23 }
  0x42   : > { %p789_p11 = pneg %p788_p10  ;;  %p795_p9 = por %p794_p7, %p793_p3 }
  0x44   : > { %p796_p1 = pnand %p795_p9, %p789_p11 }
  0x46   : > { %799 = shalt.err (!%p796_p1)
}
  0x47   : > { %696 = dma.hbm_to_vmem [thread:$0]  (!%p999_p13), %s1006_s25, 384, %s1008_s4, %s1010_s5, %s873_s8, %s873_s8, %s874_s9  }
  0x48   : > { %p1140_p0 = scmp.ne.s32.totalorder %s1135_s20, 0 }
  0x49   : > { %s1044_s6 = sand.u32 (!%p1140_p0), 1, %s862_s13   ;;  %p1141_p5 = scmp.ne.s32.totalorder (!%p1140_p0), %s1133_s18, 0 }
  0x4a   : > { %171 = sbr.rel (%p1140_p0) target bundleno = 336 (0x150), region = 32  ;;  %s174_s10 = scalar_lea.sflag (!%p1140_p0), [#allocation3], %s1044_s6 }
  0x4b   : > { %s680_s7 = smul.u32 (!%p1140_p0), 24, %s1044_s6 }
  0x4d   : > { %s1048_s11 = scalar_lea.vmem (!%p1140_p0), [#allocation2], %s680_s7 }
  0x51   : > { %845 = dma.done.wait (%p1141_p5), %s174_s10, 384  }
  0x52   : > { %847 = vsyncadd (%p1141_p5), %s174_s10, 4294966912  ;;  %p1142_p13 = scmp.eq.s32.totalorder %s920_s16, 0 }
  0x54   : > { %849 = dma.done.wait (%p1142_p13), [#allocation6], 1536   ;;  %p1143_p2 = pmov %p1142_p13 }
  0x55   : > { %vm217_vm0 = vcmask 261120   ;;  %v206_v0 = vld [vmem:[#allocation5] sm:$0xff]  ;;  %v207_v1 = vld [vmem:[#allocation5 + $0x8] sm:$0xff]  ;;  %v208_v2 = vld [vmem:[#allocation5 + $0x10] sm:$0xff]  ;;  %s585_s18 = sshll.u32 %s1044_s6, 4  ;;  %s598_s9 = sshll.u32 %s920_s16, 8 }
  0x56   : > { %851 = vsyncadd (%p1143_p2), [#allocation6], 4294965760  ;;  %v658_v3 = vpack.c.bf16 %v207_v1, %v206_v0  ;;  %v209_v4 = vld [vmem:[#allocation5 + $0x18] sm:$0xff]  ;;  %v204_v5 = vld [vmem:[%s1048_s11] sm:$0xff]  ;;  %s203_s29 = scalar_lea.vmem [#allocation7], %s585_s18  ;;  %s1078_s27 = scalar_lea.hbm %s1129_s3, %s598_s9 }
  0x57   : > { %v213_v6 = vld [vmem:[#allocation5 + $0x20] sm:$0xff]  ;;  %v662_v7 = vpack.c.bf16 %v209_v4, %v208_v2  ;;  %636 = vmatprep.mubr.msk.f32.mxu0 %vm217_vm0, %v204_v5  ;;  %v214_v8 = vld [vmem:[#allocation5 + $0x28] sm:$0xff]  ;;  %v215_v12 = vld [vmem:[#allocation5 + $0x30] sm:$0xff]  ;;  %s495_s25 = sshll.u32 %s203_s29, 4  ;;  %s482_s16 = scalar_lea.sflag [#allocation4], %s1044_s6  ;;  %s1080_s25 = int_to_ptr.vmem [resolvable:$true] %s495_s25 }
  0x58   : > { %v383_v9 = vld [vmem:[#allocation5 + $0x40] sm:$0xff]  ;;  %659 = vmatprep.subr.bf16.mxu0 %v658_v3  ;;  %v650_v10 = vpack.c.bf16 %v214_v8, %v213_v6  ;;  %v384_v11 = vld [vmem:[#allocation5 + $0x48] sm:$0xff]  ;;  %v216_v13 = vld [vmem:[#allocation5 + $0x38] sm:$0xff]  ;;  %s800_s22 = scalar_lea.vmem %s1080_s25, 256  ;;  %s876_s23 = smov [#allocation7]  }
  0x59   : > { %661 = vmatpush3.bf16.msra.mxu0 %v658_v3  ;;  %v654_v14 = vpack.c.bf16 %v216_v13, %v215_v12  ;;  %v210_v15 = vld [vmem:[%s1048_s11 + $0x1] sm:$0xff]  ;;  %v666_v16 = vpack.c.bf16 %v384_v11, %v383_v9  ;;  %v211_v22 = vld [vmem:[%s1048_s11 + $0x9] sm:$0xff]  ;;  %p801_p4 = scmp.ne.s32.totalorder %s1080_s25, %s800_s22  ;;  %s804_s28 = sshll.u32 %s876_s23, 4  ;;  %s805_s28 = int_to_ptr.vmem [resolvable:$false] %s804_s28 }
  0x5a   : > { %663 = vmatprep.subr.bf16.mxu0 %v662_v7  ;;  %651 = vmatprep.subr.bf16.mxu1 %v650_v10  ;;  %v385_v17 = vld [vmem:[#allocation5 + $0x50] sm:$0xff]  ;;  %v386_v18 = vld [vmem:[#allocation5 + $0x58] sm:$0xff]  ;;  %s806_s26 = scalar_lea.vmem %s805_s28, 512  ;;  %p807_p10 = scmp.lt.s32.totalorder %s1080_s25, %s805_s28 }
  0x5b   : > { %653 = vmatpush3.bf16.msra.mxu1 %v650_v10  ;;  %625 = vmatprep.mubr.msk.f32.mxu1 %vm217_vm0, %v210_v15  ;;  %v205_v19 = vld [vmem:[%s1048_s11 + $0x8] sm:$0xff]  ;;  %v670_v20 = vpack.c.bf16 %v386_v18, %v385_v17  ;;  %p802_p6 = pnand %p801_p4, %p993_p12  ;;  %p808_p11 = scmp.lt.s32.totalorder %s806_s26, %s800_s22 }
  0x5c   : > { %655 = vmatprep.subr.bf16.mxu1 %v654_v14  ;;  %v380_v21 = vld [vmem:[%s1048_s11 + $0x2] sm:$0xff]  ;;  %v381_v23 = vld [vmem:[%s1048_s11 + $0xa] sm:$0xff] }
  0x5d   : > { %665 = vmatpush3.bf16.msra.mxu0 %v662_v7  ;;  %v592_v27 = vld [vmem:[%s1128_s2] ss:$0 sm:$0xff]  ;;  %p803_p8 = pneg %p802_p6  ;;  %p809_p3 = por %p808_p11, %p807_p10 }
  0x5e   : > { %667 = vmatprep.subr.bf16.mxu0 %v666_v16 }
  0x5f   : > { %657 = vmatpush3.bf16.msra.mxu1 %v654_v14  ;;  %p810_p7 = pnand %p809_p3, %p803_p8 }
  0x60   : > { %637 = vmatmul.mubr.msk.f32.vlgmr.msra.gmra.mrb[0].mxu0 %vm217_vm0, %v205_v19 }
  0x61   : > { %669 = vmatpush3.bf16.msra.mxu0 %v666_v16  ;;  %647 = vmatprep.mubr.msk.f32.mxu0 %vm217_vm0, %v380_v21 }
  0x62   : > { %671 = vmatprep.subr.bf16.mxu0 %v670_v20  ;;  %626 = vmatmul.mubr.msk.f32.vlgmr.msra.gmra.mrb[0].mxu1 %vm217_vm0, %v211_v22 }
  0x65   : > { %673 = vmatpush3.bf16.msra.mxu0 %v670_v20 }
  0x68   : > { %648 = vmatmul.mubr.msk.f32.vlgmr.msra.gmra.mrb[0].mxu0 %vm217_vm0, %v381_v23 }
 0x135   : > { %v627_v24 = vpop.f32.mrb[0].mxu1 }
 0x136   : > { %v290_v25 = vpop.f32.mrb[1].mxu1 }
 0x13b   : > { %v649_v26 = vpop.f32.mrb[0].mxu0 }
 0x13c   : > { %v674_v28 = vadd.f32 %v649_v26, %v627_v24  ;;  %v459_v29 = vpop.f32.mrb[1].mxu0 }
 0x13d   : > { %v675_v30 = vadd.f32 %v459_v29, %v290_v25 }
 0x13e   : > { %v478_v31 = vadd.f32 %v674_v28, %v592_v27 }
 0x13f   : > { %v477_v32 = vadd.f32 %v675_v30, %v592_v27 }
 0x140   : > { %480 = vst.msk [vmem:[%s203_s29 + $0x8] sm:$0xff] %vm217_vm0, %v478_v31 }
 0x141   : > { %479 = vst.msk [vmem:[%s203_s29] sm:$0xff] %vm217_vm0, %v477_v32 }
 0x142   : > { %813 = shalt.err (!%p810_p7)
}
 0x143   : > { %s814_s30 = scalar_lea.hbm %s1078_s27, 256  ;;  %s818_s11 = scalar_lea.hbm %s1129_s3, 512 }
 0x144   : > { %p815_p9 = scmp.ne.s32.totalorder %s1078_s27, %s814_s30  ;;  %p819_p5 = scmp.lt.u32.totalorder %s1078_s27, %s1129_s3 }
 0x145   : > { %p820_p13 = scmp.lt.u32.totalorder %s818_s11, %s814_s30  ;;  %p822_p4 = scmp.lt.u32.totalorder %s814_s30, %s1078_s27 }
 0x146   : > { %p816_p1 = pnand %p815_p9, %p993_p12 }
 0x147   : > { %p821_p2 = por %p820_p13, %p819_p5 }
 0x148   : > { %p817_p0 = pneg %p816_p1 }
 0x149   : > { %p823_p6 = por %p822_p4, %p821_p2 }
 0x14b   : > { %p824_p8 = pnand %p823_p6, %p817_p0 }
 0x14d   : > { %827 = shalt.err (!%p824_p8)
}
 0x14e   : > { %s877_s8 = smov 128   ;;  %s878_s9 = smov 8  }
 0x14f   : > { %687 = dma.vmem_to_hbm [thread:$0]  (%p993_p12), %s1080_s25, 256, %s1078_s27, %s482_s16, %s877_s8, %s877_s8, %s878_s9  }
 0x150 PF: > { %s510_s29 = sand.u32 1, %s858_s12   ;;  %p1144_p10 = scmp.ne.s32.totalorder %s1134_s19, 0 }
 0x151   : > { %p1145_p11 = scmp.ge.s32.totalorder %s870_s15, 2  ;;  %s511_s4 = scalar_lea.sflag [#allocation4], %s510_s29 }
 0x153   : > { %p698_p3 = pnand %p1145_p11, %p1144_p10 }
 0x155   : > { %853 = dma.done.wait (!%p698_p3), %s511_s4, 256  }
 0x156   : > { %855 = vsyncadd (!%p698_p3), %s511_s4, 4294967040  ;;  %p17_p7 = scmp.ge.s32.totalorder %s955_s24, 4   ;;  %s1146_s12 = smov %s862_s13 }
 0x157   : > { %s1147_s13 = smov %s866_s14  ;;  %s1148_s14 = smov %s989_s17 }
 0x158   : > { %s1149_s15 = smov %s955_s24  ;;  %19 = sbr.rel (!%p17_p7) target bundleno = 6 (0x6), region = 83 }
 0x15f   :  { %516 = vsyncpa [#allocation3], 1 }
 0x160   :  { %518 = vsyncpa [#allocation3 + $0x1], 1 }
 0x161   :  { %519 = vsyncpa [#allocation6], 1 }
 0x162   :  { %520 = vsyncpa [#allocation4], 1 }
 0x163   :  { %522 = vsyncpa [#allocation4 + $0x1], 1 }

</bundles_post_ra>
